<compile_context>
chip_gen: v5e
topology: v5e:2x2
jax: 0.10.0
libtpu: 0.0.40
codegen_flags: <defaults>
</compile_context>

<pallas_src>
import jax
import jax.numpy as jnp
from jax.experimental import pallas as pl
from jax.experimental.pallas import tpu as pltpu

# Logical (PyTorch module) dims
NINPUT = 89 * 2   # 178
NHIDDEN = 100
NCLASS = 2

# Only the hidden dim is padded (lives purely in VMEM, zero HBM cost).
NHIDDEN_P = 128


def _round_up(n, m):
    return ((n + m - 1) // m) * m


def mlp_kernel(x_ref, w1_ref, b1_ref, w2_ref, b2_ref, o_ref):
    # fc1 -> ReLU -> fc2, all operands VMEM-resident, f32 MXU accumulation.
    x = x_ref[...]
    h = jnp.dot(x, w1_ref[...], preferred_element_type=jnp.float32) + b1_ref[...]
    h = jnp.maximum(h, 0.0)                      # ReLU
    # dropout p=0 -> identity (F.dropout(out, 0) is a no-op)
    out = jnp.dot(h, w2_ref[...], preferred_element_type=jnp.float32) + b2_ref[...]
    o_ref[...] = out.astype(o_ref.dtype)


def pad_params(w1, b1, w2, b2):
    """One-time zero-pad of the hidden dim only.
    w1: [NINPUT, NHIDDEN]  -> [NINPUT, NHIDDEN_P]
    b1: [1, NHIDDEN]       -> [1, NHIDDEN_P]
    w2: [NHIDDEN, NCLASS]  -> [NHIDDEN_P, NCLASS]
    b2: [1, NCLASS]        -> unchanged
    """
    w1p = jnp.pad(w1, ((0, 0), (0, NHIDDEN_P - NHIDDEN)))
    b1p = jnp.pad(b1, ((0, 0), (0, NHIDDEN_P - NHIDDEN)))
    w2p = jnp.pad(w2, ((0, NHIDDEN_P - NHIDDEN), (0, 0)))
    return w1p, b1p, w2p, b2


def mlp_forward(x, w1p, b1p, w2p, b2p, *, tb=1024):
    """x: [B, NINPUT]; padded params from pad_params().  Returns [B, NCLASS]."""
    B = x.shape[0]
    assert x.shape[1] == NINPUT

    # Pad batch only to a multiple of 8 sublanes (never to a multiple of the tile).
    Bp = _round_up(B, 8)
    if Bp != B:
        x = jnp.pad(x, ((0, Bp - B), (0, 0)))

    # Batch tile: multiple of 8, capped at tb.  Force >=2 grid steps when
    # possible so the "parallel" batch axis can be sharded across v7x's 2 TCs.
    tb_eff = min(tb, Bp)
    if Bp > 8 and pl.cdiv(Bp, tb_eff) < 2:
        tb_eff = _round_up(pl.cdiv(Bp, 2), 8)
    grid = (pl.cdiv(Bp, tb_eff),)   # ragged last block handled by Pallas

    out = pl.pallas_call(
        mlp_kernel,
        out_shape=jax.ShapeDtypeStruct((Bp, NCLASS), x.dtype),
        grid_spec=pl.GridSpec(
            grid=grid,
            in_specs=[
                # x: streamed per batch tile; last dim = full 178 (no padding)
                pl.BlockSpec((tb_eff, NINPUT), lambda i: (i, 0)),
                # weights / biases: constant index_map -> VMEM-resident, no re-DMA
                pl.BlockSpec((NINPUT, NHIDDEN_P), lambda i: (0, 0)),
                pl.BlockSpec((1, NHIDDEN_P), lambda i: (0, 0)),
                pl.BlockSpec((NHIDDEN_P, NCLASS), lambda i: (0, 0)),
                pl.BlockSpec((1, NCLASS), lambda i: (0, 0)),
            ],
            # narrow (B, 2) output: last dim = full array dim, no 128-wide padding
            out_specs=pl.BlockSpec((tb_eff, NCLASS), lambda i: (i, 0)),
        ),
        compiler_params=pltpu.CompilerParams(
            dimension_semantics=("parallel",),     # shard batch tiles across TCs (v7x)
            vmem_limit_bytes=32 * 1024 * 1024,     # plenty of headroom for tb<=2048 f32
        ),
    )(x, w1p, b1p, w2p, b2p)

    return out[:B] if Bp != B else out


def init_params(key):
    """Deterministic init mimicking nn.Linear (uniform +-1/sqrt(fan_in)).
    Weights stored pre-transposed as [in_features, out_features]."""
    k1, k2, k3, k4 = jax.random.split(key, 4)
    bound1 = 1.0 / jnp.sqrt(NINPUT)
    bound2 = 1.0 / jnp.sqrt(NHIDDEN)
    w1 = jax.random.uniform(k1, (NINPUT, NHIDDEN), jnp.float32, -bound1, bound1)
    b1 = jax.random.uniform(k2, (1, NHIDDEN), jnp.float32, -bound1, bound1)
    w2 = jax.random.uniform(k3, (NHIDDEN, NCLASS), jnp.float32, -bound2, bound2)
    b2 = jax.random.uniform(k4, (1, NCLASS), jnp.float32, -bound2, bound2)
    return w1, b1, w2, b2


if __name__ == "__main__":
    key = jax.random.PRNGKey(0)
    kx, kp = jax.random.split(key)

    # Small demo batch (not a power of two / not tile-aligned, to exercise the
    # multiple-of-8 batch pad and the ragged last grid block).
    B = 24
    x = jax.random.normal(kx, (B, NINPUT), jnp.float32)
    w1, b1, w2, b2 = init_params(kp)
    w1p, b1p, w2p, b2p = pad_params(w1, b1, w2, b2)   # pad hidden dim once at init

    out = mlp_forward(x, w1p, b1p, w2p, b2p)
    out = jax.block_until_ready(out)

    # reference check in plain JAX (unpadded params)
    ref = jnp.maximum(x @ w1 + b1, 0.0) @ w2 + b2
    assert out.shape == (B, NCLASS)
    assert jnp.allclose(out, ref, atol=1e-4, rtol=1e-4)

    print("KERNEL_OK")
</pallas_src>

<mosaic_0001>
module attributes {stable_mosaic.version = 11 : i64} {
  func.func @mlp_kernel(%arg0: i32, %arg1: memref<16x178xf32, #tpu.memory_space<vmem>>, %arg2: memref<178x128xf32, #tpu.memory_space<vmem>>, %arg3: memref<1x128xf32, #tpu.memory_space<vmem>>, %arg4: memref<128x2xf32, #tpu.memory_space<vmem>>, %arg5: memref<1x2xf32, #tpu.memory_space<vmem>>, %arg6: memref<16x2xf32, #tpu.memory_space<vmem>>) attributes {dimension_semantics = [#tpu.dimension_semantics<parallel>], iteration_bounds = array<i64: 2>, scalar_prefetch = 0 : i64, scratch_operands = 0 : i64, tpu.core_type = #tpu.core_type<tc>, window_params = [{transform_indices = @transform_0, window_bounds = array<i64: 16, 178>}, {pipeline_mode = #tpu.pipeline_mode<synchronous>, transform_indices = @transform_1, window_bounds = array<i64: 178, 128>}, {pipeline_mode = #tpu.pipeline_mode<synchronous>, transform_indices = @transform_2, window_bounds = array<i64: 1, 128>}, {pipeline_mode = #tpu.pipeline_mode<synchronous>, transform_indices = @transform_3, window_bounds = array<i64: 128, 2>}, {pipeline_mode = #tpu.pipeline_mode<synchronous>, transform_indices = @transform_4, window_bounds = array<i64: 1, 2>}, {transform_indices = @transform_5, window_bounds = array<i64: 16, 2>}]} {
    %c0 = arith.constant 0 : index
    %c0_0 = arith.constant 0 : index
    %0 = vector.load %arg1[%c0, %c0_0] : memref<16x178xf32, #tpu.memory_space<vmem>>, vector<16x178xf32>
    %c0_1 = arith.constant 0 : index
    %c0_2 = arith.constant 0 : index
    %1 = vector.load %arg2[%c0_1, %c0_2] : memref<178x128xf32, #tpu.memory_space<vmem>>, vector<178x128xf32>
    %cst = arith.constant dense<0.000000e+00> : vector<16x128xf32>
    %2 = tpu.matmul %0, %1, %cst {dimension_numbers = #tpu.dot_dimension_numbers<[1], [0], [0], [1], [0, 0, 1, 1], [], []>} : vector<16x178xf32>, vector<178x128xf32>, vector<16x128xf32> -> vector<16x128xf32>
    %c0_3 = arith.constant 0 : index
    %c0_4 = arith.constant 0 : index
    %3 = vector.load %arg3[%c0_3, %c0_4] : memref<1x128xf32, #tpu.memory_space<vmem>>, vector<1x128xf32>
    %4 = vector.broadcast %3 : vector<1x128xf32> to vector<16x128xf32>
    %5 = arith.addf %2, %4 : vector<16x128xf32>
    %cst_5 = arith.constant 0.000000e+00 : f32
    %6 = vector.broadcast %cst_5 : f32 to vector<16x128xf32>
    %7 = arith.maximumf %5, %6 : vector<16x128xf32>
    %c0_6 = arith.constant 0 : index
    %c0_7 = arith.constant 0 : index
    %8 = vector.load %arg4[%c0_6, %c0_7] : memref<128x2xf32, #tpu.memory_space<vmem>>, vector<128x2xf32>
    %cst_8 = arith.constant dense<0.000000e+00> : vector<16x2xf32>
    %9 = tpu.matmul %7, %8, %cst_8 {dimension_numbers = #tpu.dot_dimension_numbers<[1], [0], [0], [1], [0, 0, 1, 1], [], []>} : vector<16x128xf32>, vector<128x2xf32>, vector<16x2xf32> -> vector<16x2xf32>
    %c0_9 = arith.constant 0 : index
    %c0_10 = arith.constant 0 : index
    %10 = vector.load %arg5[%c0_9, %c0_10] : memref<1x2xf32, #tpu.memory_space<vmem>>, vector<1x2xf32>
    %11 = vector.broadcast %10 : vector<1x2xf32> to vector<16x2xf32>
    %12 = arith.addf %9, %11 : vector<16x2xf32>
    %c0_11 = arith.constant 0 : index
    %c0_12 = arith.constant 0 : index
    %13 = vector.load %arg6[%c0_11, %c0_12] : memref<16x2xf32, #tpu.memory_space<vmem>>, vector<16x2xf32>
    tpu.vector_store %arg6[%c0_11, %c0_12], %12 {strides = array<i32>} : memref<16x2xf32, #tpu.memory_space<vmem>>, vector<16x2xf32>,
    return
  }
  func.func @transform_0(%arg0: i32) -> (i32, i32) {
    %c0_i32 = arith.constant 0 : i32
    %c0_i32_0 = arith.constant 0 : i32
    return %arg0, %c0_i32 : i32, i32
  }
  func.func @transform_1(%arg0: i32) -> (i32, i32) {
    %c0_i32 = arith.constant 0 : i32
    %c0_i32_0 = arith.constant 0 : i32
    %c0_i32_1 = arith.constant 0 : i32
    return %c0_i32, %c0_i32_0 : i32, i32
  }
  func.func @transform_2(%arg0: i32) -> (i32, i32) {
    %c0_i32 = arith.constant 0 : i32
    %c0_i32_0 = arith.constant 0 : i32
    %c0_i32_1 = arith.constant 0 : i32
    return %c0_i32, %c0_i32_0 : i32, i32
  }
  func.func @transform_3(%arg0: i32) -> (i32, i32) {
    %c0_i32 = arith.constant 0 : i32
    %c0_i32_0 = arith.constant 0 : i32
    %c0_i32_1 = arith.constant 0 : i32
    return %c0_i32, %c0_i32_0 : i32, i32
  }
  func.func @transform_4(%arg0: i32) -> (i32, i32) {
    %c0_i32 = arith.constant 0 : i32
    %c0_i32_0 = arith.constant 0 : i32
    %c0_i32_1 = arith.constant 0 : i32
    return %c0_i32, %c0_i32_0 : i32, i32
  }
  func.func @transform_5(%arg0: i32) -> (i32, i32) {
    %c0_i32 = arith.constant 0 : i32
    %c0_i32_0 = arith.constant 0 : i32
    return %arg0, %c0_i32 : i32, i32
  }
}

</mosaic_0001>

<bundles_post_ra>
// kernel: tpu_custom_call.1
= control target key start
LH: loop header
LB: loop body
LE: loop exit
PB: predicated region body
PF: predicated region fallthrough
CT: control target
= control target key end

     0   :  { %10 = vsyncpa [#allocation3], 0  ;;  %s947_s18 = smov 0   ;;  %s949_s19 = smov 0   ;;  %s1102_s0 = inlined_call_operand.vmem [shape: f32[24,178], index: 0, kind: input, shape index: {}]   ;;  %s1103_s1 = inlined_call_operand.hbm [shape: f32[178,128], index: 1, kind: input, shape index: {}]   ;;  %s1104_s2 = inlined_call_operand.vmem [shape: f32[1,128], index: 2, kind: input, shape index: {}]   ;;  %s1105_s3 = inlined_call_operand.vmem [shape: f32[128,2], index: 3, kind: input, shape index: {}]   ;;  %s1106_s4 = inlined_call_operand.vmem [shape: f32[1,2], index: 4, kind: input, shape index: {}]   ;;  %s1107_s5 = inlined_call_operand.vmem [shape: f32[24,2], index: 5, kind: output, shape index: {}]  }
   0x1   :  { %s951_s20 = smov 0  }
   0x2 LB: > { %s960_s21 = sadd.s32 4294967295, %s880_s20   ;;  %s962_s22 = sadd.s32 1, %s880_s20   ;;  %s880_s20 = sphi %s951_s20, %s1111_s20   ;;  %s876_s19 = sphi %s949_s19, %s1110_s19   ;;  %s872_s18 = sphi %s947_s18, %s1109_s18  }
   0x3   : > { %s130_s23 = ssub.s32 %s880_s20, %s962_s22  ;;  %s133_s24 = sadd.s32 1, %s876_s19 }
   0x4   : > { %p131_p0 = scmp.eq.s32.totalorder %s130_s23, 0  ;;  %p143_p1 = scmp.ne.s32.totalorder %s876_s19, %s872_s18 }
   0x5   : > { %p144_p2 = scmp.eq.s32.totalorder %s960_s21, 1  ;;  %p640_p3 = scmp.ge.s32.totalorder %s880_s20, 1 }
   0x6   : > { %s970_s25 = scalar_select %p131_p0, %s876_s19, %s133_s24  }
   0x7   : > { %p972_p4 = por %p144_p2, %p143_p1  ;;  %p157_p5 = scmp.lt.s32.totalorder %s880_s20, 3 }
   0x8   : > { %p697_p6 = scmp.eq.s32.totalorder %s960_s21, 0  ;;  %s168_s29 = sshll.u32 %s1103_s1, 4  ;;  %s169_s29 = int_to_ptr.hbm [resolvable:$true] %s168_s29 }
   0x9   : > { %p158_p7 = pnand %p640_p3, %p157_p5  ;;  %s914_s30 = smov [#allocation2]  }
   0xa   : > { %s170_s6 = sshll.u32 %s914_s30, 4  ;;  %s915_s7 = smov 128   ;;  %s171_s6 = int_to_ptr.vmem [resolvable:$true] %s170_s6 }
   0xb   : > { %p693_p8 = pneg %p158_p7  ;;  %s916_s8 = smov 8  }
   0xc   : > { %215 = sbr.rel (%p158_p7) target bundleno = 364 (0x16c), region = 40 }
   0xd   : > { %p694_p9 = pnand %p697_p6, %p693_p8 }
   0xf   : > { %696 = dma.hbm_to_vmem [thread:$0]  (!%p694_p9), %s169_s29, 2944, %s171_s6, [#allocation3], %s915_s7, %s915_s7, %s916_s8  }
  0x11   : > { %867 = dma.done.wait (%p697_p6), [#allocation3], 2944  }
  0x12   : > { %869 = vsyncadd (%p697_p6), [#allocation3], 4294964352  ;;  %v290_v0 = vld [vmem:[#allocation2 + $0x78] sm:$0xff]  ;;  %v289_v1 = vld [vmem:[#allocation2 + $0x70] sm:$0xff]  ;;  %s987_s9 = sshll.u32 %s960_s21, 1  ;;  %vm309_vm0 = vcmask 1041408  }
  0x13   : > { %313 = vmatpush.msra.mxu0 %v290_v0  ;;  %673 = vmatpush.msra.mxu3 %v290_v0  ;;  %v288_v2 = vld [vmem:[#allocation2 + $0x68] sm:$0xff]  ;;  %v297_v3 = vld [vmem:[#allocation2 + $0xb0] sm:$0x3]  ;;  %p255_p10 = scmp.lt.s32.totalorder %s987_s9, 2  ;;  %v287_v4 = vld [vmem:[#allocation2 + $0x60] sm:$0xff]  ;;  %vm302_vm1 = vcmask 408576  }
  0x14   : > { %649 = vmatpush.msk.msra.mxu1 %vm309_vm0, %v297_v3  ;;  %v296_v5 = vld [vmem:[#allocation2 + $0xa8] sm:$0xff]  ;;  %v295_v6 = vld [vmem:[#allocation2 + $0xa0] sm:$0xff]  ;;  %v286_v7 = vld [vmem:[#allocation2 + $0x58] sm:$0xff]  ;;  %s246_s13 = sand.u32 1, %s872_s18   ;;  %vm404_vm2 = vcmask 15360   ;;  %s415_s18 = ssub.s32 (%p972_p4), 3, %s987_s9 }
  0x15   : > { %314 = vmatpush.msra.mxu0 %v289_v1  ;;  %674 = vmatpush.msra.mxu3 %v289_v1  ;;  %v294_v8 = vld [vmem:[#allocation2 + $0x98] sm:$0xff]  ;;  %s256_s10 = scalar_select %p255_p10, %s987_s9, 2  ;;  %v285_v9 = vld [vmem:[#allocation2 + $0x50] sm:$0xff]  ;;  %v284_v13 = vld [vmem:[#allocation2 + $0x48] sm:$0xff] }
  0x16   : > { %346 = vmatpush.msra.mxu1 %v296_v5  ;;  %v293_v10 = vld [vmem:[#allocation2 + $0x90] sm:$0xff]  ;;  %v376_v11 = vld [vmem:[%s1105_s3 + $0x78] sm:$0xff]  ;;  %v292_v14 = vld [vmem:[#allocation2 + $0x88] sm:$0xff]  ;;  %s645_s14 = sshll.u32 %s246_s13, 4  ;;  %s670_s20 = sshll.u32 (%p972_p4), %s960_s21, 4 }
  0x17   : > { %315 = vmatpush.msra.mxu0 %v288_v2  ;;  %675 = vmatpush.msra.mxu3 %v288_v2  ;;  %v375_v12 = vld [vmem:[%s1105_s3 + $0x70] sm:$0xff]  ;;  %s669_s15 = sshll.u32 %s256_s10, 4  ;;  %v374_v15 = vld [vmem:[%s1105_s3 + $0x68] sm:$0xff]  ;;  %v283_v16 = vld [vmem:[#allocation2 + $0x40] sm:$0xff]  ;;  %s1057_s17 = scalar_lea.vmem [#allocation4], %s645_s14  }
  0x18   : > { %347 = vmatpush.msra.mxu1 %v295_v6  ;;  %381 = vmatpush.msra.mxu2 %v376_v11  ;;  %v291_v17 = vld [vmem:[#allocation2 + $0x80] sm:$0xff]  ;;  %v282_v19 = vld [vmem:[#allocation2 + $0x38] sm:$0xff]  ;;  %s1006_s28 = scalar_lea.vmem %s1102_s0, %s669_s15  ;;  %v281_v22 = vld [vmem:[#allocation2 + $0x30] sm:$0xff]  ;;  %p416_p11 = scmp.lt.s32.totalorder (%p972_p4), %s415_s18, 2 }
  0x19   : > { %316 = vmatpush.msra.mxu0 %v287_v4  ;;  %676 = vmatpush.msra.mxu3 %v287_v4  ;;  %v373_v18 = vld [vmem:[%s1105_s3 + $0x60] sm:$0xff]  ;;  %v272_v20 = vld [vmem:[%s1006_s28 + $0x8] sm:$0xff]  ;;  %v372_v21 = vld [vmem:[%s1105_s3 + $0x58] sm:$0xff]  ;;  %s1068_s27 = scalar_lea.vmem (%p972_p4), %s1107_s5, %s670_s20  }
  0x1a   : > { %348 = vmatpush.msra.mxu1 %v294_v8  ;;  %382 = vmatpush.msra.mxu2 %v375_v12  ;;  %v371_v23 = vld [vmem:[%s1105_s3 + $0x50] sm:$0xff]  ;;  %v280_v24 = vld [vmem:[#allocation2 + $0x28] sm:$0xff]  ;;  %v279_v26 = vld [vmem:[#allocation2 + $0x20] sm:$0xff] }
  0x1b   : > { %317 = vmatpush.msra.mxu0 %v286_v7  ;;  %677 = vmatpush.msra.mxu3 %v286_v7  ;;  %v370_v25 = vld [vmem:[%s1105_s3 + $0x48] sm:$0xff]  ;;  %v369_v27 = vld [vmem:[%s1105_s3 + $0x40] sm:$0xff]  ;;  %v278_v28 = vld [vmem:[#allocation2 + $0x18] sm:$0xff] }
  0x1c   : > { %349 = vmatpush.msra.mxu1 %v293_v10  ;;  %383 = vmatpush.msra.mxu2 %v374_v15  ;;  %v274_v29 = vld [vmem:[%s1006_s28 + $0x18] sm:$0xff]  ;;  %v277_v31 = vld [vmem:[#allocation2 + $0x10] sm:$0xff]  ;;  %v276_v33 = vld [vmem:[#allocation2 + $0x8] sm:$0xff] }
  0x1d   : > { %318 = vmatpush.msra.mxu0 %v285_v9  ;;  %678 = vmatpush.msra.mxu3 %v285_v9  ;;  %v368_v30 = vld [vmem:[%s1105_s3 + $0x38] sm:$0xff]  ;;  %v367_v32 = vld [vmem:[%s1105_s3 + $0x30] sm:$0xff]  ;;  %v366_v34 = vld [vmem:[%s1105_s3 + $0x28] sm:$0xff] }
  0x1e   : > { %350 = vmatpush.msra.mxu1 %v292_v14  ;;  %384 = vmatpush.msra.mxu2 %v373_v18  ;;  %v275_v35 = vld [vmem:[#allocation2] sm:$0xff]  ;;  %v273_v37 = vld [vmem:[%s1006_s28 + $0x10] sm:$0xff]  ;;  %v364_v39 = vld [vmem:[%s1105_s3 + $0x18] sm:$0xff] }
  0x1f   : > { %319 = vmatpush.msra.mxu0 %v284_v13  ;;  %679 = vmatpush.msra.mxu3 %v284_v13  ;;  %v271_v36 = vld [vmem:[%s1006_s28] sm:$0xff]  ;;  %v363_v40 = vld [vmem:[%s1105_s3 + $0x10] sm:$0xff]  ;;  %v362_v41 = vld [vmem:[%s1105_s3 + $0x8] sm:$0xff] }
  0x20   : > { %351 = vmatpush.msra.mxu1 %v291_v17  ;;  %385 = vmatpush.msra.mxu2 %v372_v21  ;;  %v365_v38 = vld [vmem:[%s1105_s3 + $0x20] sm:$0xff] }
  0x21   : > { %320 = vmatpush.msra.mxu0 %v283_v16  ;;  %680 = vmatpush.msra.mxu3 %v283_v16  ;;  %v361_v42 = vld [vmem:[%s1105_s3] sm:$0xff] }
  0x22   : > { %650 = vmatmul.msk.f32.vlgmr.msra.gmra.mxu1 %vm302_vm1, %v272_v20  ;;  %386 = vmatpush.msra.mxu2 %v371_v23  ;;  %v790_v44 = vld [vmem:[%s1104_s2] ss:$0 sm:$0xff] }
  0x23   : > { %321 = vmatpush.msra.mxu0 %v282_v19  ;;  %681 = vmatpush.msra.mxu3 %v282_v19  ;;  %v791_v54 = vld [vmem:[%s1106_s4] ss:$0 sm:$0xff] }
  0x24   : > { %387 = vmatpush.msra.mxu2 %v370_v25 }
  0x25   : > { %322 = vmatpush.msra.mxu0 %v281_v22  ;;  %682 = vmatpush.msra.mxu3 %v281_v22 }
  0x26   : > { %388 = vmatpush.msra.mxu2 %v369_v27 }
  0x27   : > { %323 = vmatpush.msra.mxu0 %v280_v24  ;;  %683 = vmatpush.msra.mxu3 %v280_v24 }
  0x28   : > { %389 = vmatpush.msra.mxu2 %v368_v30 }
  0x29   : > { %324 = vmatpush.msra.mxu0 %v279_v26  ;;  %684 = vmatpush.msra.mxu3 %v279_v26 }
  0x2a   : > { %651 = vmatmul.msk.f32.gmra.mxu1 %vm302_vm1, %v274_v29  ;;  %390 = vmatpush.msra.mxu2 %v367_v32 }
  0x2b   : > { %325 = vmatpush.msra.mxu0 %v278_v28  ;;  %685 = vmatpush.msra.mxu3 %v278_v28 }
  0x2c   : > { %391 = vmatpush.msra.mxu2 %v366_v34 }
  0x2d   : > { %326 = vmatpush.msra.mxu0 %v277_v31  ;;  %686 = vmatpush.msra.mxu3 %v277_v31 }
  0x2e   : > { %392 = vmatpush.msra.mxu2 %v365_v38 }
  0x2f   : > { %327 = vmatpush.msra.mxu0 %v276_v33  ;;  %687 = vmatpush.msra.mxu3 %v276_v33 }
  0x30   : > { %393 = vmatpush.msra.mxu2 %v364_v39 }
  0x31   : > { %328 = vmatpush.msra.mxu0 %v275_v35  ;;  %688 = vmatpush.msra.mxu3 %v275_v35 }
  0x32   : > { %329 = vmatmul.f32.vlgmr.msra.gmra.mxu0 %v271_v36  ;;  %332 = vmatmul.f32.vlgmr.msra.gmra.mxu3 %v273_v37 }
  0x33   : > { %394 = vmatpush.msra.mxu2 %v363_v40 }
  0x35   : > { %395 = vmatpush.msra.mxu2 %v362_v41 }
  0x37   : > { %396 = vmatpush.msra.mxu2 %v361_v42 }
  0x9f   : > { %v353_v43 = vpop.f32.mrf.mxu1 }
  0xa7   : > { %v356_v50 = vpop.f32.mrf.mxu1 }
  0xaf   : > { %v330_v45 = vpop.f32.mrf.mxu0 }
  0xb0   : > { %v331_v46 = vadd.f32 %v790_v44, %v330_v45 }
  0xb2   : > { %v354_v47 = vadd.f32 %v353_v43, %v331_v46 }
  0xb4   : > { %v359_v48 = vmax.f32 %v354_v47, 0.0 }
  0xb5   : > { %v333_v49 = vpop.f32.mrf.mxu3 }
  0xb6   : > { %397 = vmatmul.f32.vlgmr.msra.gmra.mxu2 %v359_v48  ;;  %v334_v51 = vadd.f32 %v790_v44, %v333_v49 }
  0xb8   : > { %v357_v52 = vadd.f32 %v356_v50, %v334_v51 }
  0xba   : > { %v360_v53 = vmax.f32 %v357_v52, 0.0 }
  0xbe   : > { %400 = vmatmul.f32.gmra.mxu2 %v360_v53 }
 0x139   : > { %v398_v55 = vpop.f32.mrf.mxu2 }
 0x13a   : > { %v399_v56 = vadd.f32 %v791_v54, %v398_v55 }
 0x13c   : > { %405 = vst.msk [vmem:[%s1057_s17] sm:$0xff] %vm404_vm2, %v399_v56 }
 0x140   : > { %413 = sbr.rel (!%p972_p4) target bundleno = 364 (0x16c), region = 48 }
 0x141   : > { %v401_v57 = vpop.f32.mrf.mxu2 }
 0x142   : > { %v402_v58 = vadd.f32 %v791_v54, %v401_v57 }
 0x144   : > { %406 = vst.msk [vmem:[%s1057_s17 + $0x8] sm:$0xff] %vm404_vm2, %v402_v58 }
 0x145   : > { %s1113_s18 = smov (!%p416_p11, %s415_s18), 2 }
 0x146   : > { %s654_s29 = sshll.u32 %s1113_s18, 3 }
 0x147   : > { %p657_p12 = scmp.eq.s32.totalorder %s654_s29, 0 }
 0x148   : > { %s1074_s30 = sshrl.u32 (!%p657_p12), %s1113_s18, 1 }
 0x149   : > { %424 = sbr.rel (%p657_p12) target bundleno = 364 (0x16c), region = 52  ;;  %p658_p13 = scmp.le.s32.totalorder (!%p657_p12), %s1074_s30, 0 }
 0x14e   : > { %586 = sbr.rel (%p658_p13) target bundleno = 347 (0x15b), region = 129  ;;  %s882_s21 = smov (!%p658_p13), %s1068_s27  }
 0x14f   : > { %s886_s26 = smov (!%p658_p13), %s1057_s17   ;;  %s890_s9 = smov (!%p658_p13), 0  }
 0x150   : > { %s894_s6 = smov (!%p658_p13), 0  }
 0x153 LB: >> { %v489_v59 = vld [vmem:[%s888_s26] sm:$0xff]  ;;  %v491_v60 = vld [vmem:[%s888_s26 + $0x8] sm:$0xff]  ;;  %s493_s28 = sadd.s32 1, %s892_s9  ;;  %s483_s6 = sadd.s32 1, %s896_s6   ;;  %s896_s6 = sphi %s894_s6, %s483_s6   ;;  %s892_s9 = sphi %s890_s9, %s891_s9   ;;  %s888_s26 = sphi %s886_s26, %s498_s26   ;;  %s884_s21 = sphi %s882_s21, %s499_s21  }
 0x154   : >> { %490 = vst [vmem:[%s884_s21] sm:$0xff] %v489_v59  ;;  %p494_p0 = scmp.ge.s32.totalorder %s493_s28, %s1074_s30  ;;  %p482_p1 = scmp.ge.s32.totalorder %s483_s6, %s1074_s30 }
 0x155   : >> { %492 = vst [vmem:[%s884_s21 + $0x8] sm:$0xff] %v491_v60 }
 0x156   : >> { %s1115_s28 = smov (%p494_p0, %s493_s28), 0  ;;  %485 = sbr.rel (!%p482_p1) target bundleno = 339 (0x153), region = 135 }
 0x157   : >> { %s659_s7 = sshll.u32 %s1115_s28, 4  ;;  %s891_s9 = smov %s1115_s28  }
 0x158   : >> { %s498_s26 = scalar_lea.vmem %s1057_s17, %s659_s7 [#allocation4]   ;;  %s499_s21 = scalar_lea.vmem %s1068_s27, %s659_s7  }
 0x15b PF: > { %s1084_s8 = sand.u32 1, %s1113_s18   ;;  %s671_s10 = sshll.u32 %s1074_s30, 4 }
 0x15c   : > { %s504_s11 = scalar_lea.vmem %s1057_s17, %s671_s10 [#allocation4]   ;;  %s506_s12 = scalar_lea.vmem %s1068_s27, %s671_s10  }
 0x15d   : > { %p664_p2 = scmp.le.s32.totalorder %s1084_s8, 0 }
 0x15e   : > { %s898_s13 = smov (!%p664_p2), %s506_s12   ;;  %s902_s14 = smov (!%p664_p2), %s504_s11  }
 0x15f   : > { %600 = sbr.rel (%p664_p2) target bundleno = 364 (0x16c), region = 140  ;;  %s906_s15 = smov (!%p664_p2), 0  }
 0x160   : > { %s910_s16 = smov (!%p664_p2), 0  }
 0x164 LB: >> { %v516_v61 = vld [vmem:[%s904_s14] sm:$0xff]  ;;  %s518_s18 = sadd.s32 1, %s908_s15  ;;  %s510_s16 = sadd.s32 1, %s912_s16   ;;  %s912_s16 = sphi %s910_s16, %s510_s16   ;;  %s908_s15 = sphi %s906_s15, %s907_s15   ;;  %s904_s14 = sphi %s902_s14, %s523_s14   ;;  %s900_s13 = sphi %s898_s13, %s524_s13  }
 0x165   : >> { %517 = vst [vmem:[%s900_s13] sm:$0xff] %v516_v61  ;;  %p519_p3 = scmp.ge.s32.totalorder %s518_s18, %s1084_s8  ;;  %p509_p4 = scmp.ge.s32.totalorder %s510_s16, %s1084_s8 }
 0x167   : >> { %s1117_s18 = smov (%p519_p3, %s518_s18), 0  ;;  %512 = sbr.rel (!%p509_p4) target bundleno = 356 (0x164), region = 146 }
 0x168   : >> { %s665_s17 = sshll.u32 %s1117_s18, 3  ;;  %s907_s15 = smov %s1117_s18  }
 0x169   : >> { %s523_s14 = scalar_lea.vmem %s504_s11, %s665_s17 [#allocation4]   ;;  %s524_s13 = scalar_lea.vmem %s506_s12, %s665_s17  }
 0x16c PF: > { %p13_p5 = scmp.ge.s32.totalorder %s962_s22, 4   ;;  %s1109_s18 = smov %s876_s19 }
 0x16d   : > { %s1110_s19 = smov %s970_s25  ;;  %s1111_s20 = smov %s962_s22 }
 0x16e   :  { %15 = sbr.rel (!%p13_p5) target bundleno = 2 (0x2), region = 157 }
 0x173   :  { %540 = vsyncpa [#allocation3], 1 }
 0x174   :  { %542 = vsyncpa [#allocation3 + $0x1], 1 }

</bundles_post_ra>
